<compile_context>
chip_gen: v7x
topology: tpu7x:2x2x1
jax: 0.10.0
libtpu: 0.0.40
codegen_flags: <defaults>
</compile_context>

<pallas_src>
import functools

import jax
import jax.numpy as jnp
from jax.experimental import pallas as pl
from jax.experimental.pallas import tpu as pltpu

BN_EPS = 1e-5


# ---------------------------------------------------------------------------
# Pass 1: tiled sum over T (f32 accumulator) + excitation MLP at last T step.
#   s = sigmoid( relu( mean_T(x) @ W1 + b1 ) @ W2' + b2' )   with BN folded
# ---------------------------------------------------------------------------
def _pool_excite_kernel(x_ref, w1_ref, b1_ref, w2_ref, b2_ref, s_ref, acc_ref,
                        *, T, t_blk, mask_tail):
    t = pl.program_id(1)

    @pl.when(t == 0)
    def _():
        acc_ref[...] = jnp.zeros_like(acc_ref)

    x = x_ref[...]                                   # (tB, C, t_blk), input dtype
    if mask_tail:
        col = jax.lax.broadcasted_iota(jnp.int32, x.shape, dimension=2)
        valid = (t * t_blk + col) < T
        xs = jnp.where(valid, x.astype(jnp.float32), 0.0)
    else:
        xs = x.astype(jnp.float32)
    acc_ref[...] += jnp.sum(xs, axis=-1)             # (tB, C) f32 running sum

    @pl.when(t == pl.num_programs(1) - 1)
    def _():
        pooled = acc_ref[...] * (1.0 / T)            # normalize by the true T
        h = jnp.dot(pooled, w1_ref[...], preferred_element_type=jnp.float32)
        h = jnp.maximum(h + b1_ref[...], 0.0)
        g = jnp.dot(h, w2_ref[...], preferred_element_type=jnp.float32)
        g = jax.nn.sigmoid(g + b2_ref[...])
        s_ref[...] = g[:, :, None].astype(s_ref.dtype)


# ---------------------------------------------------------------------------
# Pass 2: gating — out = x * s, tiled over (B, T), multiply in input dtype.
# ---------------------------------------------------------------------------
def _gate_kernel(s_ref, x_ref, out_ref):
    out_ref[...] = (x_ref[...] * s_ref[...]).astype(out_ref.dtype)


def _choose_tiles(B, C, T, itemsize, target_block_bytes=4 * 1024 * 1024):
    # Lane-dense time tile: the full T when small, else 1024 (multiple of 128);
    # ragged tails are masked in pass 1 and clipped by Pallas writeback in pass 2.
    t_blk = T if T <= 1024 else 1024
    row_bytes = max(1, C * t_blk * itemsize)
    b_blk = max(1, min(B, target_block_bytes // row_bytes))
    return int(b_blk), int(t_blk)


def se_module(x, w1, b1, gamma, beta, rm, rv, w2, b2):
    """x: (B, C, T). Conv weights pre-transposed: w1 (C, Cb), w2 (Cb, C)."""
    B, C, T = x.shape
    Cb = w1.shape[1]

    # Fold BatchNorm (inference, running stats) into the second 1x1 conv:
    #   BN(h) @ W2 + b2 == h @ (diag(scale) W2) + ((beta - rm*scale) @ W2 + b2)
    scale = gamma * jax.lax.rsqrt(rv + BN_EPS)                 # (1, Cb)
    w2f = (w2 * scale.reshape(Cb, 1)).astype(jnp.float32)      # (Cb, C)
    b2f = (b2 + (beta - rm * scale) @ w2).astype(jnp.float32)  # (1, C)
    w1f = w1.astype(jnp.float32)
    b1f = b1.astype(jnp.float32)

    itemsize = jnp.dtype(x.dtype).itemsize
    b_blk, t_blk = _choose_tiles(B, C, T, itemsize)
    nB, nT = pl.cdiv(B, b_blk), pl.cdiv(T, t_blk)
    block_bytes = b_blk * C * t_blk * itemsize
    vmem_limit = int(min(64 * 1024 * 1024,
                         max(32 * 1024 * 1024, 6 * block_bytes + (2 << 20))))

    x_spec = pl.BlockSpec((b_blk, C, t_blk), lambda b, t: (b, 0, t))
    s_spec = pl.BlockSpec((b_blk, C, 1), lambda b, t: (b, 0, 0))
    w_spec = lambda shp: pl.BlockSpec(shp, lambda b, t: (0, 0))

    # ---- pass 1: pooled mean + excitation MLP → s of shape (B, C, 1) --------
    kernel1 = functools.partial(_pool_excite_kernel, T=T, t_blk=t_blk,
                                mask_tail=(T % t_blk != 0))
    s = pl.pallas_call(
        kernel1,
        out_shape=jax.ShapeDtypeStruct((B, C, 1), x.dtype),
        grid_spec=pltpu.PrefetchScalarGridSpec(
            num_scalar_prefetch=0,
            grid=(nB, nT),
            in_specs=[x_spec,
                      w_spec((C, Cb)),   # w1
                      w_spec((1, Cb)),   # b1
                      w_spec((Cb, C)),   # w2 (BN-folded)
                      w_spec((1, C))],   # b2 (BN-folded)
            out_specs=s_spec,
            scratch_shapes=[pltpu.VMEM((b_blk, C), jnp.float32)]),
        compiler_params=pltpu.CompilerParams(
            dimension_semantics=("parallel", "arbitrary"),
            vmem_limit_bytes=vmem_limit),
    )(x, w1f, b1f, w2f, b2f)

    # ---- pass 2: out = x * s (broadcast over T) ------------------------------
    out = pl.pallas_call(
        _gate_kernel,
        out_shape=jax.ShapeDtypeStruct((B, C, T), x.dtype),
        grid_spec=pltpu.PrefetchScalarGridSpec(
            num_scalar_prefetch=0,
            grid=(nB, nT),
            in_specs=[s_spec, x_spec],
            out_specs=x_spec),
        compiler_params=pltpu.CompilerParams(
            dimension_semantics=("parallel", "parallel"),
            vmem_limit_bytes=vmem_limit),
    )(s, x)
    return out


def se_module_ref(x, w1, b1, gamma, beta, rm, rv, w2, b2):
    """Pure-JAX reference of the same forward pass."""
    pooled = jnp.mean(x.astype(jnp.float32), axis=-1)            # (B, C)
    h = pooled @ w1 + b1                                         # (B, Cb)
    h = jnp.maximum(h, 0.0)
    h = (h - rm) * jax.lax.rsqrt(rv + BN_EPS) * gamma + beta
    s = jax.nn.sigmoid(h @ w2 + b2)                              # (B, C)
    return x.astype(jnp.float32) * s[:, :, None]


if __name__ == "__main__":
    B, C, T = 4, 64, 256
    Cb = 32  # bottleneck

    key = jax.random.PRNGKey(0)
    ks = jax.random.split(key, 9)

    x = jax.random.normal(ks[0], (B, C, T), dtype=jnp.float32)
    # Conv1d(C, Cb, 1) weight is (Cb, C, 1) in PyTorch; stored pre-transposed (C, Cb).
    w1 = jax.random.normal(ks[1], (C, Cb), dtype=jnp.float32) * 0.1
    b1 = jax.random.normal(ks[2], (1, Cb), dtype=jnp.float32) * 0.1
    # BatchNorm1d(Cb) params / running stats (inference semantics).
    gamma = 1.0 + 0.1 * jax.random.normal(ks[3], (1, Cb), dtype=jnp.float32)
    beta = 0.1 * jax.random.normal(ks[4], (1, Cb), dtype=jnp.float32)
    rm = 0.1 * jax.random.normal(ks[5], (1, Cb), dtype=jnp.float32)
    rv = jnp.abs(1.0 + 0.1 * jax.random.normal(ks[6], (1, Cb), dtype=jnp.float32))
    # Conv1d(Cb, C, 1) weight is (C, Cb, 1) in PyTorch; stored pre-transposed (Cb, C).
    w2 = jax.random.normal(ks[7], (Cb, C), dtype=jnp.float32) * 0.1
    b2 = jax.random.normal(ks[8], (1, C), dtype=jnp.float32) * 0.1

    # f32 path
    out = jax.block_until_ready(se_module(x, w1, b1, gamma, beta, rm, rv, w2, b2))
    ref = se_module_ref(x, w1, b1, gamma, beta, rm, rv, w2, b2)
    assert out.shape == (B, C, T)
    assert jnp.allclose(out, ref, atol=1e-4, rtol=1e-4), "f32 mismatch vs reference"

    # bf16 I/O path (halves HBM bytes on this memory-bound kernel).
    xb = x.astype(jnp.bfloat16)
    outb = jax.block_until_ready(se_module(xb, w1, b1, gamma, beta, rm, rv, w2, b2))
    refb = se_module_ref(xb, w1, b1, gamma, beta, rm, rv, w2, b2)
    assert outb.dtype == jnp.bfloat16
    assert jnp.allclose(outb.astype(jnp.float32), refb, atol=5e-2, rtol=5e-2), \
        "bf16 mismatch vs reference"

    print("KERNEL_OK")
</pallas_src>

<mosaic_0001>
module attributes {stable_mosaic.version = 11 : i64} {
  func.func @_pool_excite_kernel(%arg0: i32, %arg1: i32, %arg2: memref<4x64x256xf32, #tpu.memory_space<vmem>>, %arg3: memref<64x32xf32, #tpu.memory_space<vmem>>, %arg4: memref<1x32xf32, #tpu.memory_space<vmem>>, %arg5: memref<32x64xf32, #tpu.memory_space<vmem>>, %arg6: memref<1x64xf32, #tpu.memory_space<vmem>>, %arg7: memref<4x64x1xf32, #tpu.memory_space<vmem>>, %arg8: memref<4x64xf32, #tpu.memory_space<vmem>>) attributes {dimension_semantics = [#tpu.dimension_semantics<parallel>, #tpu.dimension_semantics<arbitrary>], iteration_bounds = array<i64: 1, 1>, scalar_prefetch = 0 : i64, scratch_operands = 1 : i64, tpu.core_type = #tpu.core_type<tc>, window_params = [{transform_indices = @transform_0, window_bounds = array<i64: 4, 64, 256>}, {pipeline_mode = #tpu.pipeline_mode<synchronous>, transform_indices = @transform_1, window_bounds = array<i64: 64, 32>}, {pipeline_mode = #tpu.pipeline_mode<synchronous>, transform_indices = @transform_2, window_bounds = array<i64: 1, 32>}, {pipeline_mode = #tpu.pipeline_mode<synchronous>, transform_indices = @transform_3, window_bounds = array<i64: 32, 64>}, {pipeline_mode = #tpu.pipeline_mode<synchronous>, transform_indices = @transform_4, window_bounds = array<i64: 1, 64>}, {transform_indices = @transform_5, window_bounds = array<i64: 4, 64, 1>}]} {
    %c0_i32 = arith.constant 0 : i32
    %0 = arith.cmpi eq, %arg1, %c0_i32 : i32
    %1 = arith.extui %0 : i1 to i32
    %c0_i32_0 = arith.constant 0 : i32
    %2 = arith.cmpi ne, %1, %c0_i32_0 : i32
    scf.if %2 {
      %cst_9 = arith.constant 0.000000e+00 : f32
      %11 = vector.broadcast %cst_9 : f32 to vector<4x64xf32>
      %c0_10 = arith.constant 0 : index
      %c0_11 = arith.constant 0 : index
      %12 = vector.load %arg8[%c0_10, %c0_11] : memref<4x64xf32, #tpu.memory_space<vmem>>, vector<4x64xf32>
      tpu.vector_store %arg8[%c0_10, %c0_11], %11 {strides = array<i32>} : memref<4x64xf32, #tpu.memory_space<vmem>>, vector<4x64xf32>,
    } else {
    }
    %c0 = arith.constant 0 : index
    %c0_1 = arith.constant 0 : index
    %c0_2 = arith.constant 0 : index
    %3 = vector.load %arg2[%c0, %c0_1, %c0_2] : memref<4x64x256xf32, #tpu.memory_space<vmem>>, vector<4x64x256xf32>
    %c0_3 = arith.constant 0 : index
    %c0_4 = arith.constant 0 : index
    %4 = vector.load %arg8[%c0_3, %c0_4] : memref<4x64xf32, #tpu.memory_space<vmem>>, vector<4x64xf32>
    %cst = arith.constant dense<0.000000e+00> : vector<4x64xf32>
    %5 = vector.multi_reduction <add>, %3, %cst [2] : vector<4x64x256xf32> to vector<4x64xf32>
    %6 = arith.addf %4, %5 : vector<4x64xf32>
    %c0_5 = arith.constant 0 : index
    %c0_6 = arith.constant 0 : index
    %7 = vector.load %arg8[%c0_5, %c0_6] : memref<4x64xf32, #tpu.memory_space<vmem>>, vector<4x64xf32>
    tpu.vector_store %arg8[%c0_5, %c0_6], %6 {strides = array<i32>} : memref<4x64xf32, #tpu.memory_space<vmem>>, vector<4x64xf32>,
    %c0_i32_7 = arith.constant 0 : i32
    %8 = arith.cmpi eq, %arg1, %c0_i32_7 : i32
    %9 = arith.extui %8 : i1 to i32
    %c0_i32_8 = arith.constant 0 : i32
    %10 = arith.cmpi ne, %9, %c0_i32_8 : i32
    scf.if %10 {
      %c0_9 = arith.constant 0 : index
      %c0_10 = arith.constant 0 : index
      %11 = vector.load %arg8[%c0_9, %c0_10] : memref<4x64xf32, #tpu.memory_space<vmem>>, vector<4x64xf32>
      %cst_11 = arith.constant 3.906250e-03 : f32
      %12 = vector.broadcast %cst_11 : f32 to vector<4x64xf32>
      %13 = arith.mulf %11, %12 : vector<4x64xf32>
      %c0_12 = arith.constant 0 : index
      %c0_13 = arith.constant 0 : index
      %14 = vector.load %arg3[%c0_12, %c0_13] : memref<64x32xf32, #tpu.memory_space<vmem>>, vector<64x32xf32>
      %cst_14 = arith.constant dense<0.000000e+00> : vector<4x32xf32>
      %15 = tpu.matmul %13, %14, %cst_14 {dimension_numbers = #tpu.dot_dimension_numbers<[1], [0], [0], [1], [0, 0, 1, 1], [], []>} : vector<4x64xf32>, vector<64x32xf32>, vector<4x32xf32> -> vector<4x32xf32>
      %c0_15 = arith.constant 0 : index
      %c0_16 = arith.constant 0 : index
      %16 = vector.load %arg4[%c0_15, %c0_16] : memref<1x32xf32, #tpu.memory_space<vmem>>, vector<1x32xf32>
      %17 = vector.broadcast %16 : vector<1x32xf32> to vector<4x32xf32>
      %18 = arith.addf %15, %17 : vector<4x32xf32>
      %cst_17 = arith.constant 0.000000e+00 : f32
      %19 = vector.broadcast %cst_17 : f32 to vector<4x32xf32>
      %20 = arith.maximumf %18, %19 : vector<4x32xf32>
      %c0_18 = arith.constant 0 : index
      %c0_19 = arith.constant 0 : index
      %21 = vector.load %arg5[%c0_18, %c0_19] : memref<32x64xf32, #tpu.memory_space<vmem>>, vector<32x64xf32>
      %cst_20 = arith.constant dense<0.000000e+00> : vector<4x64xf32>
      %22 = tpu.matmul %20, %21, %cst_20 {dimension_numbers = #tpu.dot_dimension_numbers<[1], [0], [0], [1], [0, 0, 1, 1], [], []>} : vector<4x32xf32>, vector<32x64xf32>, vector<4x64xf32> -> vector<4x64xf32>
      %c0_21 = arith.constant 0 : index
      %c0_22 = arith.constant 0 : index
      %23 = vector.load %arg6[%c0_21, %c0_22] : memref<1x64xf32, #tpu.memory_space<vmem>>, vector<1x64xf32>
      %24 = vector.broadcast %23 : vector<1x64xf32> to vector<4x64xf32>
      %25 = arith.addf %22, %24 : vector<4x64xf32>
      %26 = arith.negf %25 : vector<4x64xf32>
      %27 = math.exp %26 : vector<4x64xf32>
      %cst_23 = arith.constant 1.000000e+00 : f32
      %28 = vector.broadcast %cst_23 : f32 to vector<4x64xf32>
      %29 = arith.addf %28, %27 : vector<4x64xf32>
      %30 = arith.divf %28, %29 : vector<4x64xf32>
      %31 = vector.shape_cast %30 : vector<4x64xf32> to vector<4x64x1xf32>
      %c0_24 = arith.constant 0 : index
      %c0_25 = arith.constant 0 : index
      %c0_26 = arith.constant 0 : index
      %32 = vector.load %arg7[%c0_24, %c0_25, %c0_26] : memref<4x64x1xf32, #tpu.memory_space<vmem>>, vector<4x64x1xf32>
      tpu.vector_store %arg7[%c0_24, %c0_25, %c0_26], %31 {strides = array<i32>} : memref<4x64x1xf32, #tpu.memory_space<vmem>>, vector<4x64x1xf32>,
    } else {
    }
    return
  }
  func.func @transform_0(%arg0: i32, %arg1: i32) -> (i32, i32, i32) {
    %c0_i32 = arith.constant 0 : i32
    %c0_i32_0 = arith.constant 0 : i32
    return %arg0, %c0_i32, %arg1 : i32, i32, i32
  }
  func.func @transform_1(%arg0: i32, %arg1: i32) -> (i32, i32) {
    %c0_i32 = arith.constant 0 : i32
    %c0_i32_0 = arith.constant 0 : i32
    %c0_i32_1 = arith.constant 0 : i32
    return %c0_i32, %c0_i32_0 : i32, i32
  }
  func.func @transform_2(%arg0: i32, %arg1: i32) -> (i32, i32) {
    %c0_i32 = arith.constant 0 : i32
    %c0_i32_0 = arith.constant 0 : i32
    %c0_i32_1 = arith.constant 0 : i32
    return %c0_i32, %c0_i32_0 : i32, i32
  }
  func.func @transform_3(%arg0: i32, %arg1: i32) -> (i32, i32) {
    %c0_i32 = arith.constant 0 : i32
    %c0_i32_0 = arith.constant 0 : i32
    %c0_i32_1 = arith.constant 0 : i32
    return %c0_i32, %c0_i32_0 : i32, i32
  }
  func.func @transform_4(%arg0: i32, %arg1: i32) -> (i32, i32) {
    %c0_i32 = arith.constant 0 : i32
    %c0_i32_0 = arith.constant 0 : i32
    %c0_i32_1 = arith.constant 0 : i32
    return %c0_i32, %c0_i32_0 : i32, i32
  }
  func.func @transform_5(%arg0: i32, %arg1: i32) -> (i32, i32, i32) {
    %c0_i32 = arith.constant 0 : i32
    %c0_i32_0 = arith.constant 0 : i32
    %c0_i32_1 = arith.constant 0 : i32
    return %arg0, %c0_i32, %c0_i32_0 : i32, i32, i32
  }
}

</mosaic_0001>

<bundles_post_ra>
// kernel: tpu_custom_call.1
= control target key start
LH: loop header
LB: loop body
LE: loop exit
PB: predicated region body
PF: predicated region fallthrough
CT: control target
= control target key end

     0   :  { %10 = vsyncpa [#allocation4], 0  ;;  %s880_s18 = smov [#allocation3]   ;;  %s1237_s0 = inlined_call_operand.hbm [shape: f32[4,64,256], index: 0, kind: input, shape index: {}]   ;;  %s1238_s1 = inlined_call_operand.vmem [shape: f32[64,32], index: 1, kind: input, shape index: {}]   ;;  %s1239_s2 = inlined_call_operand.vmem [shape: f32[1,32], index: 2, kind: input, shape index: {}]   ;;  %s1240_s3 = inlined_call_operand.vmem [shape: f32[32,64], index: 3, kind: input, shape index: {}]   ;;  %s1241_s4 = inlined_call_operand.vmem [shape: f32[1,64], index: 4, kind: input, shape index: {}]   ;;  %s1242_s5 = inlined_call_operand.vmem [shape: f32[4,64,1], index: 5, kind: output, shape index: {}]  }
   0x1   :  { %s16_s19 = sshll.u32 %s880_s18, 4  ;;  %s856_s22 = scalar_lea.hbm %s1237_s0, 8192  ;;  %s17_s19 = int_to_ptr.vmem [resolvable:$true] %s16_s19 }
   0x2   :  { %p857_p0 = scmp.ne.s32.totalorder %s1237_s0, %s856_s22  ;;  %p860_p1 = scmp.lt.u32.totalorder %s856_s22, %s1237_s0 }
   0x4   :  { %p862_p2 = pnand %p860_p1, %p857_p0 }
   0x6   :  { %865 = shalt.err (!%p862_p2)
}
   0x7   :  { %s866_s27 = scalar_lea.vmem %s17_s19, 8192  ;;  %p871_p4 = scmp.lt.s32.totalorder %s17_s19, %s17_s19 }
   0x8   :  { %p867_p3 = scmp.ne.s32.totalorder %s17_s19, %s866_s27  ;;  %p872_p5 = scmp.lt.s32.totalorder %s866_s27, %s866_s27 }
   0xa   :  { %p873_p6 = por %p872_p5, %p871_p4 }
   0xc   :  { %p874_p7 = pnand %p873_p6, %p867_p3 }
   0xe   :  { %877 = shalt.err (!%p874_p7)
}
   0xf   :  { %s881_s28 = smov 256   ;;  %s882_s29 = smov 16  }
  0x10   :  { %22 = dma.hbm_to_vmem [thread:$0]  %s1237_s0, 8192, %s17_s19, [#allocation4], %s881_s28, %s881_s28, %s882_s29  }
  0x11   :  { %878 = dma.done.wait [#allocation4], 8192  }
  0x12   :  { %879 = vsyncadd [#allocation4], 4294959104  ;;  %v56_v0 = vld [vmem:[#allocation3 + $0x80] sm:$0xff]  ;;  %v57_v1 = vld [vmem:[#allocation3 + $0x88] sm:$0xff]  ;;  %vm38_vm0 = vcmask 519168   ;;  %vm885_vm1 = vmmov 0  }
  0x13   :  { %v40_v2 = vld [vmem:[#allocation3] sm:$0xff]  ;;  %v129_v3 = vadd.f32 %v57_v1, %v56_v0  ;;  %v41_v4 = vld [vmem:[#allocation3 + $0x8] sm:$0xff]  ;;  %v58_v5 = vld [vmem:[#allocation3 + $0x90] sm:$0xff]  ;;  %vm244_vm2 = vcmask 130112   ;;  %vm251_vm3 = vcmask 195712   ;;  %vm258_vm4 = vcmask 261312  }
  0x14   :  { %v59_v6 = vld [vmem:[#allocation3 + $0x98] sm:$0xff]  ;;  %v105_v7 = vadd.f32 %v41_v4, %v40_v2  ;;  %v42_v8 = vld [vmem:[#allocation3 + $0x10] sm:$0xff]  ;;  %v60_v12 = vld [vmem:[#allocation3 + $0xa0] sm:$0xff]  ;;  %vm265_vm5 = vcmask 326912   ;;  %vm272_vm6 = vcmask 392512   ;;  %vm279_vm7 = vcmask 458112  }
  0x15   :  { %v43_v9 = vld [vmem:[#allocation3 + $0x18] sm:$0xff]  ;;  %130 = vadd.xlane.f32.xlu1 %v129_v3  ;;  %v132_v10 = vadd.f32 %v59_v6, %v58_v5  ;;  %v61_v13 = vld [vmem:[#allocation3 + $0xa8] sm:$0xff]  ;;  %v44_v14 = vld [vmem:[#allocation3 + $0x20] sm:$0xff]  ;;  %vm286_vm8 = vcmask 523712   ;;  %vm405_vm9 = vcmask 1041409   ;;  %vm407_vm10 = vcmask 1042434  }
  0x16   :  { %106 = vadd.xlane.f32.xlu0 %v105_v7  ;;  %v108_v11 = vadd.f32 %v43_v9, %v42_v8  ;;  %v45_v15 = vld [vmem:[#allocation3 + $0x28] sm:$0xff]  ;;  %v135_v16 = vadd.f32 %v61_v13, %v60_v12  ;;  %v74_v18 = vld [vmem:[#allocation3 + $0x110] sm:$0xff]  ;;  %v75_v19 = vld [vmem:[#allocation3 + $0x118] sm:$0xff]  ;;  %vm409_vm11 = vcmask 1043459   ;;  %vm435_vm12 = vcmask 523264  }
  0x17   :  { %v111_v17 = vadd.f32 %v45_v15, %v44_v14  ;;  %v72_v20 = vld [vmem:[#allocation3 + $0x100] sm:$0xff]  ;;  %v73_v21 = vld [vmem:[#allocation3 + $0x108] sm:$0xff]  ;;  %v156_v22 = vadd.f32 %v75_v19, %v74_v18  ;;  %v62_v24 = vld [vmem:[#allocation3 + $0xb0] sm:$0xff]  ;;  %vm521_vm13 = vcmask 261120   ;;  %vm741_vm14 = vcmask 7168  }
  0x18   :  { %v153_v23 = vadd.f32 %v73_v21, %v72_v20  ;;  %v63_v25 = vld [vmem:[#allocation3 + $0xb8] sm:$0xff]  ;;  %v46_v26 = vld [vmem:[#allocation3 + $0x30] sm:$0xff]  ;;  %v88_v30 = vld [vmem:[#allocation3 + $0x180] sm:$0xff] }
  0x19   :  { %133 = vadd.xlane.f32.xlu1 %v132_v10  ;;  %v47_v27 = vld [vmem:[#allocation3 + $0x38] sm:$0xff]  ;;  %v138_v28 = vadd.f32 %v63_v25, %v62_v24  ;;  %v89_v31 = vld [vmem:[#allocation3 + $0x188] sm:$0xff]  ;;  %v76_v32 = vld [vmem:[#allocation3 + $0x120] sm:$0xff] }
  0x1a   :  { %109 = vadd.xlane.f32.xlu0 %v108_v11  ;;  %v114_v29 = vadd.f32 %v47_v27, %v46_v26  ;;  %v77_v33 = vld [vmem:[#allocation3 + $0x128] sm:$0xff]  ;;  %v177_v34 = vadd.f32 %v89_v31, %v88_v30  ;;  %v48_v36 = vld [vmem:[#allocation3 + $0x40] sm:$0xff]  ;;  %v90_v38 = vld [vmem:[#allocation3 + $0x190] sm:$0xff] }
  0x1b   :  { %v159_v35 = vadd.f32 %v77_v33, %v76_v32  ;;  %v49_v37 = vld [vmem:[#allocation3 + $0x48] sm:$0xff]  ;;  %v91_v39 = vld [vmem:[#allocation3 + $0x198] sm:$0xff]  ;;  %v78_v42 = vld [vmem:[#allocation3 + $0x130] sm:$0xff]  ;;  %v883_v32 = vmov 0.0  }
  0x1c   :  { %v117_v40 = vadd.f32 %v49_v37, %v48_v36  ;;  %v180_v41 = vadd.f32 %v91_v39, %v90_v38  ;;  %v79_v43 = vld [vmem:[#allocation3 + $0x138] sm:$0xff]  ;;  %v64_v44 = vld [vmem:[#allocation3 + $0xc0] sm:$0xff]  ;;  %v65_v45 = vld [vmem:[#allocation3 + $0xc8] sm:$0xff]  ;;  %39 = vst.msk [vmem:[#allocation2] sm:$0xf] %vm38_vm0, %v883_v32  ;;  %v884_v36 = vmov 0.0|0.0   ;;  %814 = vmatprep.mubr.msk.f32.mxu0 %vm885_vm1, %v883_v32  ;;  %825 = vmatprep.mubr.msk.f32.mxu1 %vm885_vm1, %v883_v32 }
  0x1d   :  { %136 = vadd.xlane.f32.xlu1 %v135_v16  ;;  %v162_v46 = vadd.f32 %v79_v43, %v78_v42  ;;  %v141_v47 = vadd.f32 %v65_v45, %v64_v44  ;;  %v50_v48 = vld [vmem:[#allocation3 + $0x50] sm:$0xff]  ;;  %v51_v49 = vld [vmem:[#allocation3 + $0x58] sm:$0xff]  ;;  %v92_v50 = vld [vmem:[#allocation3 + $0x1a0] sm:$0xff]  ;;  %828 = vmatprep.subr.bf16.mxu0 %v884_v36 }
  0x1e   :  { %112 = vadd.xlane.f32.xlu0 %v111_v17  ;;  %v93_v51 = vld [vmem:[#allocation3 + $0x1a8] sm:$0xff]  ;;  %v120_v52 = vadd.f32 %v51_v49, %v50_v48  ;;  %v80_v54 = vld [vmem:[#allocation3 + $0x140] sm:$0xff]  ;;  %v66_v56 = vld [vmem:[#allocation3 + $0xd0] sm:$0xff]  ;;  %840 = vmatprep.subr.bf16.mxu1 %v884_v36 }
  0x1f   :  { %v183_v53 = vadd.f32 %v93_v51, %v92_v50  ;;  %v81_v55 = vld [vmem:[#allocation3 + $0x148] sm:$0xff]  ;;  %v67_v57 = vld [vmem:[#allocation3 + $0xd8] sm:$0xff]  ;;  %v52_v60 = vld [vmem:[#allocation3 + $0x60] sm:$0xff] }
  0x20   :  { %v165_v58 = vadd.f32 %v81_v55, %v80_v54  ;;  %v144_v59 = vadd.f32 %v67_v57, %v66_v56  ;;  %v53_v61 = vld [vmem:[#allocation3 + $0x68] sm:$0xff]  ;;  %v94_v62 = vld [vmem:[#allocation3 + $0x1b0] sm:$0xff]  ;;  %v95_v63 = vld [vmem:[#allocation3 + $0x1b8] sm:$0xff] }
  0x21   :  { %157 = vadd.xlane.f32.xlu1 %v156_v22  ;;  %v123_v0 = vadd.f32 %v53_v61, %v52_v60  ;;  %v186_v1 = vadd.f32 %v95_v63, %v94_v62  ;;  %v82_v2 = vld [vmem:[#allocation3 + $0x150] sm:$0xff]  ;;  %v83_v3 = vld [vmem:[#allocation3 + $0x158] sm:$0xff]  ;;  %v68_v4 = vld [vmem:[#allocation3 + $0xe0] sm:$0xff] }
  0x22   :  { %154 = vadd.xlane.f32.xlu0 %v153_v23  ;;  %v69_v5 = vld [vmem:[#allocation3 + $0xe8] sm:$0xff]  ;;  %v168_v6 = vadd.f32 %v83_v3, %v82_v2  ;;  %v54_v8 = vld [vmem:[#allocation3 + $0x70] sm:$0xff]  ;;  %v55_v9 = vld [vmem:[#allocation3 + $0x78] sm:$0xff]  ;;  %v233_v2 = vlaneseq }
  0x23   :  { %v147_v7 = vadd.f32 %v69_v5, %v68_v4  ;;  %v96_v10 = vld [vmem:[#allocation3 + $0x1c0] sm:$0xff]  ;;  %v97_v11 = vld [vmem:[#allocation3 + $0x1c8] sm:$0xff]  ;;  %v126_v12 = vadd.f32 %v55_v9, %v54_v8  ;;  %v70_v16 = vld [vmem:[#allocation3 + $0xf0] sm:$0xff] }
  0x24   :  { %v189_v13 = vadd.f32 %v97_v11, %v96_v10  ;;  %v84_v14 = vld [vmem:[#allocation3 + $0x160] sm:$0xff]  ;;  %v85_v15 = vld [vmem:[#allocation3 + $0x168] sm:$0xff]  ;;  %v71_v17 = vld [vmem:[#allocation3 + $0xf8] sm:$0xff]  ;;  %v234_v5 = vand.u32 127, %v233_v2  ;;  %v993_v10 = vshrl.u32 %v233_v2, 7 }
  0x25   :  { %139 = vadd.xlane.f32.xlu1 %v138_v28  ;;  %v171_v18 = vadd.f32 %v85_v15, %v84_v14  ;;  %v150_v19 = vadd.f32 %v71_v17, %v70_v16  ;;  %v86_v20 = vld [vmem:[#allocation3 + $0x170] sm:$0xff]  ;;  %v87_v21 = vld [vmem:[#allocation3 + $0x178] sm:$0xff]  ;;  %v100_v28 = vld [vmem:[#allocation3 + $0x1e0] sm:$0xff] }
  0x26   :  { %115 = vadd.xlane.f32.xlu0 %v114_v29  ;;  %v98_v22 = vld [vmem:[#allocation3 + $0x1d0] sm:$0xff]  ;;  %v99_v23 = vld [vmem:[#allocation3 + $0x1d8] sm:$0xff]  ;;  %v174_v24 = vadd.f32 %v87_v21, %v86_v20  ;;  %v101_v29 = vld [vmem:[#allocation3 + $0x1e8] sm:$0xff]  ;;  %v246_v8 = vadd.s32 4294967280, %v234_v5  ;;  %v260_v14 = vadd.s32 4294967264, %v234_v5  ;;  %v267_v15 = vadd.s32 4294967256, %v234_v5 }
  0x27   :  { %v192_v25 = vadd.f32 %v99_v23, %v98_v22  ;;  %v102_v26 = vld [vmem:[#allocation3 + $0x1f0] sm:$0xff]  ;;  %v103_v27 = vld [vmem:[#allocation3 + $0x1f8] sm:$0xff]  ;;  %v195_v31 = vadd.f32 %v101_v29, %v100_v28  ;;  %v274_v17 = vadd.s32 4294967248, %v234_v5  ;;  %v281_v28 = vadd.s32 4294967240, %v234_v5 }
  0x28   :  { %v198_v30 = vadd.f32 %v103_v27, %v102_v26  ;;  %v420_v33 = vld [vmem:[%s1238_s1] sm:$0xff]  ;;  %v422_v37 = vld [vmem:[%s1238_s1 + $0x10] sm:$0xff]  ;;  %v423_v38 = vld [vmem:[%s1238_s1 + $0x18] sm:$0xff]  ;;  %v999_v16 = vsub.s32 %v246_v8, %v993_v10  ;;  %v1010_v23 = vsub.s32 %v260_v14, %v993_v10 }
  0x29   :  { %178 = vadd.xlane.f32.xlu1 %v177_v34  ;;  %v421_v34 = vld [vmem:[%s1238_s1 + $0x8] sm:$0xff]  ;;  %v832_v39 = vpack.c.bf16 %v423_v38, %v422_v37  ;;  %v426_v43 = vld [vmem:[%s1238_s1 + $0x30] sm:$0xff]  ;;  %v427_v44 = vld [vmem:[%s1238_s1 + $0x38] sm:$0xff]  ;;  %v1017_v27 = vsub.s32 %v274_v17, %v993_v10 }
  0x2a   :  { %160 = vadd.xlane.f32.xlu0 %v159_v35  ;;  %v829_v35 = vpack.c.bf16 %v421_v34, %v420_v33  ;;  %v838_v45 = vpack.c.bf16 %v427_v44, %v426_v43  ;;  %v284_v44 = vsub.s32 %v281_v28, %v993_v10 }
  0x2c   :  { %830 = vmatpush3.bf16.msra.mxu0 %v829_v35 }
  0x2d   :  { %118 = vadd.xlane.f32.xlu1 %v117_v40  ;;  %831 = vmatprep.subr.bf16.mxu0 %v884_v36  ;;  %v424_v40 = vld [vmem:[%s1238_s1 + $0x20] sm:$0xff] }
  0x2e   :  { %181 = vadd.xlane.f32.xlu0 %v180_v41  ;;  %v425_v41 = vld [vmem:[%s1238_s1 + $0x28] sm:$0xff] }
  0x2f   :  { %v835_v42 = vpack.c.bf16 %v425_v41, %v424_v40 }
  0x30   :  { %833 = vmatpush3.bf16.msra.mxu0 %v832_v39 }
  0x31   :  { %163 = vadd.xlane.f32.xlu1 %v162_v46  ;;  %834 = vmatprep.subr.bf16.mxu0 %v884_v36  ;;  %v510_v46 = vld [vmem:[%s1240_s3] sm:$0xff] }
  0x32   :  { %142 = vadd.xlane.f32.xlu0 %v141_v47  ;;  %v511_v47 = vld [vmem:[%s1240_s3 + $0x8] sm:$0xff] }
  0x33   :  { %v841_v48 = vpack.c.bf16 %v511_v47, %v510_v46 }
  0x34   :  { %836 = vmatpush3.bf16.msra.mxu0 %v835_v42 }
  0x35   :  { %121 = vadd.xlane.f32.xlu1 %v120_v52  ;;  %837 = vmatprep.subr.bf16.mxu0 %v884_v36 }
  0x36   :  { %184 = vadd.xlane.f32.xlu0 %v183_v53  ;;  %842 = vmatpush3.bf16.msra.mxu1 %v841_v48 }
  0x37   :  { %843 = vmatprep.subr.bf16.mxu1 %v884_v36 }
  0x38   :  { %839 = vmatpush3.bf16.msra.mxu0 %v838_v45 }
  0x39   :  { %166 = vadd.xlane.f32.xlu1 %v165_v58 }
  0x3a   :  { %145 = vadd.xlane.f32.xlu0 %v144_v59 }
  0x3d   :  { %124 = vadd.xlane.f32.xlu1 %v123_v0 }
  0x3e   :  { %187 = vadd.xlane.f32.xlu0 %v186_v1 }
  0x41   :  { %169 = vadd.xlane.f32.xlu1 %v168_v6 }
  0x42   :  { %148 = vadd.xlane.f32.xlu0 %v147_v7  ;;  %v239_v7 = vadd.s32 4294967288, %v234_v5 }
  0x45   :  { %127 = vadd.xlane.f32.xlu1 %v126_v12  ;;  %v253_v12 = vadd.s32 4294967272, %v234_v5 }
  0x46   :  { %190 = vadd.xlane.f32.xlu0 %v189_v13  ;;  %v242_v13 = vsub.s32 %v239_v7, %v993_v10 }
  0x47   :  { %v1007_v21 = vsub.s32 %v253_v12, %v993_v10 }
  0x49   :  { %172 = vadd.xlane.f32.xlu1 %v171_v18 }
  0x4a   :  { %151 = vadd.xlane.f32.xlu0 %v150_v19  ;;  %v237_v19 = vsub.s32 %v234_v5, %v993_v10 }
  0x4d   :  { %175 = vadd.xlane.f32.xlu1 %v174_v24  ;;  %v1013_v24 = vsub.s32 %v267_v15, %v993_v10 }
  0x4e   :  { %193 = vadd.xlane.f32.xlu0 %v192_v25 }
  0x51   :  { %199 = vadd.xlane.f32.xlu1 %v198_v30 }
  0x52   :  { %196 = vadd.xlane.f32.xlu0 %v195_v31 }
  0xa2   :  { %v131_v49 = vpop.xlane.xlu1 %130 }
  0xa3   :  { %v959_v50 = vpop.xlane.xlu0 %106  ;;  %v291_v30 = vrot.slane %v131_v49, %v237_v19 }
  0xa4   :  { %v238_v35 = vrot.slane %v959_v50, %v237_v19 }
  0xa6   :  { %v134_v51 = vpop.xlane.xlu1 %133 }
  0xa7   :  { %v110_v52 = vpop.xlane.xlu0 %109  ;;  %v295_v22 = vrot.slane %v134_v51, %v242_v13 }
  0xa8   :  { %v243_v25 = vrot.slane %v110_v52, %v242_v13 }
  0xa9   :  { %v296_v39 = vsel %vm244_vm2, %v295_v22, %v291_v30 }
  0xaa   :  { %v137_v53 = vpop.xlane.xlu1 %136  ;;  %v245_v42 = vsel %vm244_vm2, %v243_v25, %v238_v35 }
  0xab   :  { %v961_v54 = vpop.xlane.xlu0 %112  ;;  %v300_v26 = vrot.slane %v137_v53, %v999_v16 }
  0xac   :  { %v250_v31 = vrot.slane %v961_v54, %v999_v16 }
  0xad   :  { %v301_v43 = vsel %vm251_vm3, %v300_v26, %v296_v39  ;;  %v512_v39 = vld [vmem:[%s1240_s3 + $0x10] sm:$0xff] }
  0xae   :  { %v963_v55 = vpop.xlane.xlu1 %157  ;;  %v252_v46 = vsel %vm251_vm3, %v250_v31, %v245_v42  ;;  %v779_v42 = vld [vmem:[%s1239_s2] ss:$0 sm:$0xff] }
  0xaf   :  { %v965_v56 = vpop.xlane.xlu0 %154  ;;  %v334_v32 = vrot.slane %v963_v55, %v242_v13 }
  0xb0   :  { %v330_v33 = vrot.slane %v965_v56, %v237_v19 }
  0xb2   :  { %v967_v57 = vpop.xlane.xlu1 %139  ;;  %v335_v47 = vsel %vm244_vm2, %v334_v32, %v330_v33  ;;  %v104_v33 = vld [vmem:[#allocation2] sm:$0xf] }
  0xb3   :  { %v969_v58 = vpop.xlane.xlu0 %115  ;;  %v305_v36 = vrot.slane %v967_v57, %v1007_v21 }
  0xb4   :  { %v257_v37 = vrot.slane %v969_v58, %v1007_v21 }
  0xb5   :  { %v306_v51 = vsel %vm258_vm4, %v305_v36, %v301_v43 }
  0xb6   :  { %v971_v59 = vpop.xlane.xlu1 %178  ;;  %v259_v52 = vsel %vm258_vm4, %v257_v37, %v252_v46 }
  0xb7   :  { %v973_v60 = vpop.xlane.xlu0 %160  ;;  %v369_v48 = vrot.slane %v971_v59, %v237_v19 }
  0xb8   :  { %v339_v38 = vrot.slane %v973_v60, %v999_v16 }
  0xba   :  { %v975_v61 = vpop.xlane.xlu1 %118  ;;  %v340_v53 = vsel %vm251_vm3, %v339_v38, %v335_v47  ;;  %v781_v47 = vld [vmem:[%s1241_s4] ss:$0 sm:$0xff] }
  0xbb   :  { %v977_v62 = vpop.xlane.xlu0 %181  ;;  %v264_v40 = vrot.slane %v975_v61, %v1010_v23 }
  0xbc   :  { %v373_v41 = vrot.slane %v977_v62, %v242_v13 }
  0xbd   :  { %v266_v55 = vsel %vm265_vm5, %v264_v40, %v259_v52  ;;  %v513_v40 = vld [vmem:[%s1240_s3 + $0x18] sm:$0xff] }
  0xbe   :  { %v979_v63 = vpop.xlane.xlu1 %163  ;;  %v374_v56 = vsel %vm244_vm2, %v373_v41, %v369_v48  ;;  %v844_v41 = vpack.c.bf16 %v513_v40, %v512_v39 }
  0xbf   :  { %v981_v0 = vpop.xlane.xlu0 %142  ;;  %v344_v49 = vrot.slane %v979_v63, %v1007_v21 }
  0xc0   :  { %v310_v54 = vrot.slane %v981_v0, %v1010_v23  ;;  %845 = vmatpush3.bf16.msra.mxu1 %v844_v41 }
  0xc1   :  { %v345_v0 = vsel %vm258_vm4, %v344_v49, %v340_v53 }
  0xc2   :  { %v983_v1 = vpop.xlane.xlu1 %121 }
  0xc3   :  { %v985_v3 = vpop.xlane.xlu0 %184  ;;  %v271_v59 = vrot.slane %v983_v1, %v1013_v24  ;;  %v311_v1 = vsel %vm265_vm5, %v310_v54, %v306_v51  ;;  %v603_v54 = vsub.s32 0, %v993_v10 }
  0xc4   :  { %v378_v60 = vrot.slane %v985_v3, %v999_v16 }
  0xc5   :  { %v273_v15 = vsel %vm272_vm6, %v271_v59, %v266_v55  ;;  %v673_v59 = vsub.s32 2, %v993_v10 }
  0xc6   :  { %v987_v4 = vpop.xlane.xlu1 %166  ;;  %v379_v16 = vsel %vm251_vm3, %v378_v60, %v374_v56 }
  0xc7   :  { %v989_v6 = vpop.xlane.xlu0 %145  ;;  %v349_v57 = vrot.slane %v987_v4, %v1010_v23 }
  0xc8   :  { %v315_v58 = vrot.slane %v989_v6, %v1013_v24 }
  0xc9   :  { %v350_v12 = vsel %vm265_vm5, %v349_v57, %v345_v0  ;;  %v638_v57 = vsub.s32 1, %v993_v10 }
  0xca   :  { %v991_v9 = vpop.xlane.xlu1 %124  ;;  %v316_v13 = vsel %vm272_vm6, %v315_v58, %v311_v1 }
  0xcb   :  { %v995_v11 = vpop.xlane.xlu0 %187  ;;  %v278_v3 = vrot.slane %v991_v9, %v1017_v27 }
  0xcc   :  { %v383_v2 = vrot.slane %v995_v11, %v1007_v21 }
  0xcd   :  { %v280_v25 = vsel %vm279_vm7, %v278_v3, %v273_v15 }
  0xce   :  { %v1001_v18 = vpop.xlane.xlu1 %169  ;;  %v384_v19 = vsel %vm258_vm4, %v383_v2, %v379_v16 }
  0xcf   :  { %v1004_v20 = vpop.xlane.xlu0 %148  ;;  %v354_v61 = vrot.slane %v1001_v18, %v1013_v24 }
  0xd0   :  { %v320_v62 = vrot.slane %v1004_v20, %v1017_v27 }
  0xd1   :  { %v355_v17 = vsel %vm272_vm6, %v354_v61, %v350_v12  ;;  %v708_v61 = vsub.s32 3, %v993_v10 }
  0xd2   :  { %v1019_v29 = vpop.xlane.xlu1 %127  ;;  %v321_v18 = vsel %vm279_vm7, %v320_v62, %v316_v13 }
  0xd3   :  { %v191_v34 = vpop.xlane.xlu0 %190  ;;  %v285_v14 = vrot.slane %v1019_v29, %v284_v44 }
  0xd4   :  { %v388_v7 = vrot.slane %v191_v34, %v1010_v23 }
  0xd5   :  { %v287_v29 = vsel %vm286_vm8, %v285_v14, %v280_v25 }
  0xd6   :  { %v173_v45 = vpop.xlane.xlu1 %172 }
  0xd7   :  { %v152_v50 = vpop.xlane.xlu0 %151  ;;  %v359_v4 = vrot.slane %v173_v45, %v1017_v27 }
  0xd8   :  { %v325_v5 = vrot.slane %v152_v50, %v284_v44 }
  0xd9   :  { %v360_v20 = vsel %vm279_vm7, %v359_v4, %v355_v17 }
  0xda   :  { %v176_v63 = vpop.xlane.xlu1 %175  ;;  %v326_v21 = vsel %vm286_vm8, %v325_v5, %v321_v18 }
  0xdb   :  { %v194_v6 = vpop.xlane.xlu0 %193  ;;  %v364_v8 = vrot.slane %v176_v63, %v284_v44  ;;  %v406_v31 = vsel %vm405_vm9, %v326_v21, %v287_v29 }
  0xdc   :  { %v393_v11 = vrot.slane %v194_v6, %v1013_v24  ;;  %v389_v24 = vsel %vm265_vm5, %v388_v7, %v384_v19 }
  0xdd   :  { %v365_v26 = vsel %vm286_vm8, %v364_v8, %v360_v20 }
  0xde   :  { %v200_v9 = vpop.xlane.xlu1 %199  ;;  %v394_v30 = vsel %vm272_vm6, %v393_v11, %v389_v24  ;;  %v408_v34 = vsel %vm407_vm10, %v365_v26, %v406_v31 }
  0xdf   :  { %v197_v22 = vpop.xlane.xlu0 %196  ;;  %v403_v23 = vrot.slane %v200_v9, %v284_v44 }
  0xe0   :  { %v398_v28 = vrot.slane %v197_v22, %v1017_v27 }
  0xe2   :  { %v399_v32 = vsel %vm279_vm7, %v398_v28, %v394_v30 }
  0xe3   :  { %v404_v35 = vsel %vm286_vm8, %v403_v23, %v399_v32 }
  0xe4   :  { %v410_v36 = vsel %vm409_vm11, %v404_v35, %v408_v34 }
  0xe5   :  { %v412_v37 = vadd.f32 %v410_v36, %v104_v33 }
  0xe7   :  { %414 = vst.msk [vmem:[#allocation2] sm:$0xf] %vm38_vm0, %v412_v37 }
  0xee   :  { %v418_v38 = vld [vmem:[#allocation2] sm:$0xf] }
  0xef   :  { %v419_v27 = vmul.f32 0.00390625, %v418_v38 }
  0xf1   :  { %815 = vmatmul.mubr.msk.f32.vlgmr.msra.gmra.mrb[0].mxu0 %vm435_vm12, %v419_v27 }
 0x1c4   :  { %v505_v43 = vpop.f32.mrb[0].mxu0 }
 0x1c5   :  { %v506_v44 = vadd.f32 %v779_v42, %v505_v43  ;;  %v816_v45 = vpop.f32.mrb[1].mxu0 }
 0x1c7   :  { %v509_v46 = vmax.f32 %v506_v44, 0.0 }
 0x1c9   :  { %826 = vmatmul.mubr.msk.f32.vlgmr.msra.gmra.mrb[0].mxu1 %vm521_vm13, %v509_v46 }
 0x29c   :  { %v591_v48 = vpop.f32.mrb[0].mxu1 }
 0x29d   :  { %v592_v49 = vadd.f32 %v781_v47, %v591_v48  ;;  %v827_v50 = vpop.f32.mrb[1].mxu1 }
 0x29f   :  { %v783_v51 = vmul.f32 -1.442695, %v592_v49 }
 0x2a1   :  { %852 = vpow2.f32 %v783_v51 }
 0x2ab   :  { %v853_v52 = vpop.eup %852 }
 0x2ac   :  { %v598_v53 = vadd.f32 1.0, %v853_v52 }
 0x2ae   :  { %854 = vrcp.f32 %v598_v53 }
 0x2b8   :  { %v855_v55 = vpop.eup %854 }
 0x2b9   :  { %v604_v56 = vrot.slane %v855_v55, %v603_v54  ;;  %v639_v58 = vrot.slane %v855_v55, %v638_v57  ;;  %v674_v60 = vrot.slane %v855_v55, %v673_v59  ;;  %v709_v62 = vrot.slane %v855_v55, %v708_v61 }
 0x2bb   :  { %610 = vbcast.lane.b32.xlu1 %v604_v56, 264  ;;  %606 = vbcast.lane.b32.xlu0 %v604_v56, 256 }
 0x2bf   :  { %614 = vbcast.lane.b32.xlu1 %v604_v56, 272  ;;  %622 = vbcast.lane.b32.xlu0 %v604_v56, 288 }
 0x2c3   :  { %618 = vbcast.lane.b32.xlu1 %v604_v56, 280  ;;  %630 = vbcast.lane.b32.xlu0 %v604_v56, 304 }
 0x2c7   :  { %626 = vbcast.lane.b32.xlu1 %v604_v56, 296  ;;  %641 = vbcast.lane.b32.xlu0 %v639_v58, 256 }
 0x2cb   :  { %634 = vbcast.lane.b32.xlu1 %v604_v56, 312  ;;  %649 = vbcast.lane.b32.xlu0 %v639_v58, 272 }
 0x2cf   :  { %645 = vbcast.lane.b32.xlu1 %v639_v58, 264  ;;  %657 = vbcast.lane.b32.xlu0 %v639_v58, 288 }
 0x2d3   :  { %653 = vbcast.lane.b32.xlu1 %v639_v58, 280  ;;  %665 = vbcast.lane.b32.xlu0 %v639_v58, 304 }
 0x2d7   :  { %661 = vbcast.lane.b32.xlu1 %v639_v58, 296  ;;  %676 = vbcast.lane.b32.xlu0 %v674_v60, 256 }
 0x2db   :  { %669 = vbcast.lane.b32.xlu1 %v639_v58, 312  ;;  %684 = vbcast.lane.b32.xlu0 %v674_v60, 272 }
 0x2df   :  { %680 = vbcast.lane.b32.xlu1 %v674_v60, 264  ;;  %692 = vbcast.lane.b32.xlu0 %v674_v60, 288 }
 0x2e3   :  { %688 = vbcast.lane.b32.xlu1 %v674_v60, 280  ;;  %700 = vbcast.lane.b32.xlu0 %v674_v60, 304 }
 0x2e7   :  { %696 = vbcast.lane.b32.xlu1 %v674_v60, 296  ;;  %711 = vbcast.lane.b32.xlu0 %v709_v62, 256 }
 0x2eb   :  { %704 = vbcast.lane.b32.xlu1 %v674_v60, 312  ;;  %719 = vbcast.lane.b32.xlu0 %v709_v62, 272 }
 0x2ef   :  { %715 = vbcast.lane.b32.xlu1 %v709_v62, 264  ;;  %727 = vbcast.lane.b32.xlu0 %v709_v62, 288 }
 0x2f3   :  { %723 = vbcast.lane.b32.xlu1 %v709_v62, 280  ;;  %735 = vbcast.lane.b32.xlu0 %v709_v62, 304 }
 0x2f7   :  { %731 = vbcast.lane.b32.xlu1 %v709_v62, 296 }
 0x2fb   :  { %739 = vbcast.lane.b32.xlu1 %v709_v62, 312 }
 0x32d   :  { %v611_v63 = vpop.permute.xlu1 %610  ;;  %v607_v0 = vpop.permute.xlu0 %606 }
 0x32e   :  { %743 = vst.msk [vmem:[%s1242_s5 + $0x8] sm:$0xff] %vm741_vm14, %v611_v63  ;;  %742 = vst.msk [vmem:[%s1242_s5] sm:$0xff] %vm741_vm14, %v607_v0 }
 0x331   :  { %v615_v10 = vpop.permute.xlu1 %614  ;;  %v623_v2 = vpop.permute.xlu0 %622 }
 0x332   :  { %744 = vst.msk [vmem:[%s1242_s5 + $0x10] sm:$0xff] %vm741_vm14, %v615_v10  ;;  %746 = vst.msk [vmem:[%s1242_s5 + $0x20] sm:$0xff] %vm741_vm14, %v623_v2 }
 0x335   :  { %v619_v4 = vpop.permute.xlu1 %618  ;;  %v631_v5 = vpop.permute.xlu0 %630 }
 0x336   :  { %745 = vst.msk [vmem:[%s1242_s5 + $0x18] sm:$0xff] %vm741_vm14, %v619_v4  ;;  %748 = vst.msk [vmem:[%s1242_s5 + $0x30] sm:$0xff] %vm741_vm14, %v631_v5 }
 0x339   :  { %v627_v6 = vpop.permute.xlu1 %626  ;;  %v642_v1 = vpop.permute.xlu0 %641 }
 0x33a   :  { %747 = vst.msk [vmem:[%s1242_s5 + $0x28] sm:$0xff] %vm741_vm14, %v627_v6  ;;  %750 = vst.msk [vmem:[%s1242_s5 + $0x40] sm:$0xff] %vm741_vm14, %v642_v1 }
 0x33d   :  { %v635_v3 = vpop.permute.xlu1 %634  ;;  %v650_v7 = vpop.permute.xlu0 %649 }
 0x33e   :  { %749 = vst.msk [vmem:[%s1242_s5 + $0x38] sm:$0xff] %vm741_vm14, %v635_v3  ;;  %752 = vst.msk [vmem:[%s1242_s5 + $0x50] sm:$0xff] %vm741_vm14, %v650_v7 }
 0x341   :  { %v646_v8 = vpop.permute.xlu1 %645  ;;  %v658_v12 = vpop.permute.xlu0 %657 }
 0x342   :  { %751 = vst.msk [vmem:[%s1242_s5 + $0x48] sm:$0xff] %vm741_vm14, %v646_v8  ;;  %754 = vst.msk [vmem:[%s1242_s5 + $0x60] sm:$0xff] %vm741_vm14, %v658_v12 }
 0x345   :  { %v654_v13 = vpop.permute.xlu1 %653  ;;  %v666_v14 = vpop.permute.xlu0 %665 }
 0x346   :  { %753 = vst.msk [vmem:[%s1242_s5 + $0x58] sm:$0xff] %vm741_vm14, %v654_v13  ;;  %756 = vst.msk [vmem:[%s1242_s5 + $0x70] sm:$0xff] %vm741_vm14, %v666_v14 }
 0x349   :  { %v662_v11 = vpop.permute.xlu1 %661  ;;  %v677_v15 = vpop.permute.xlu0 %676 }
 0x34a   :  { %755 = vst.msk [vmem:[%s1242_s5 + $0x68] sm:$0xff] %vm741_vm14, %v662_v11  ;;  %758 = vst.msk [vmem:[%s1242_s5 + $0x80] sm:$0xff] %vm741_vm14, %v677_v15 }
 0x34d   :  { %v670_v16 = vpop.permute.xlu1 %669  ;;  %v685_v17 = vpop.permute.xlu0 %684 }
 0x34e   :  { %757 = vst.msk [vmem:[%s1242_s5 + $0x78] sm:$0xff] %vm741_vm14, %v670_v16  ;;  %760 = vst.msk [vmem:[%s1242_s5 + $0x90] sm:$0xff] %vm741_vm14, %v685_v17 }
 0x351   :  { %v681_v18 = vpop.permute.xlu1 %680  ;;  %v693_v9 = vpop.permute.xlu0 %692 }
 0x352   :  { %759 = vst.msk [vmem:[%s1242_s5 + $0x88] sm:$0xff] %vm741_vm14, %v681_v18  ;;  %762 = vst.msk [vmem:[%s1242_s5 + $0xa0] sm:$0xff] %vm741_vm14, %v693_v9 }
 0x355   :  { %v689_v19 = vpop.permute.xlu1 %688  ;;  %v701_v20 = vpop.permute.xlu0 %700 }
 0x356   :  { %761 = vst.msk [vmem:[%s1242_s5 + $0x98] sm:$0xff] %vm741_vm14, %v689_v19  ;;  %764 = vst.msk [vmem:[%s1242_s5 + $0xb0] sm:$0xff] %vm741_vm14, %v701_v20 }
 0x359   :  { %v697_v21 = vpop.permute.xlu1 %696  ;;  %v712_v22 = vpop.permute.xlu0 %711 }
 0x35a   :  { %763 = vst.msk [vmem:[%s1242_s5 + $0xa8] sm:$0xff] %vm741_vm14, %v697_v21  ;;  %766 = vst.msk [vmem:[%s1242_s5 + $0xc0] sm:$0xff] %vm741_vm14, %v712_v22 }
 0x35d   :  { %v705_v23 = vpop.permute.xlu1 %704  ;;  %v720_v25 = vpop.permute.xlu0 %719 }
 0x35e   :  { %765 = vst.msk [vmem:[%s1242_s5 + $0xb8] sm:$0xff] %vm741_vm14, %v705_v23  ;;  %768 = vst.msk [vmem:[%s1242_s5 + $0xd0] sm:$0xff] %vm741_vm14, %v720_v25 }
 0x361   :  { %v716_v24 = vpop.permute.xlu1 %715  ;;  %v728_v26 = vpop.permute.xlu0 %727 }
 0x362   :  { %767 = vst.msk [vmem:[%s1242_s5 + $0xc8] sm:$0xff] %vm741_vm14, %v716_v24  ;;  %770 = vst.msk [vmem:[%s1242_s5 + $0xe0] sm:$0xff] %vm741_vm14, %v728_v26 }
 0x365   :  { %v724_v28 = vpop.permute.xlu1 %723  ;;  %v736_v29 = vpop.permute.xlu0 %735 }
 0x366   :  { %769 = vst.msk [vmem:[%s1242_s5 + $0xd8] sm:$0xff] %vm741_vm14, %v724_v28  ;;  %772 = vst.msk [vmem:[%s1242_s5 + $0xf0] sm:$0xff] %vm741_vm14, %v736_v29 }
 0x369   :  { %v732_v30 = vpop.permute.xlu1 %731 }
 0x36a   :  { %771 = vst.msk [vmem:[%s1242_s5 + $0xe8] sm:$0xff] %vm741_vm14, %v732_v30 }
 0x36d   :  { %v740_v31 = vpop.permute.xlu1 %739 }
 0x36e   :  { %773 = vst.msk [vmem:[%s1242_s5 + $0xf8] sm:$0xff] %vm741_vm14, %v740_v31 }
 0x36f   :  { %778 = vsyncpa [#allocation4], 1 }

</bundles_post_ra>
